<compile_context>
chip_gen: v5e
topology: v5e:2x2
jax: 0.10.0
libtpu: 0.0.40
codegen_flags: <defaults>
</compile_context>

<pallas_src>
import jax
import jax.numpy as jnp
from jax.experimental import pallas as pl
from jax.experimental.pallas import tpu as pltpu


_LANES = 128
_MAX_BLOCK_ROWS = 2048  # 1 MiB f32 per input per grid step


def _round_up(x, m):
    return ((x + m - 1) // m) * m


def _att_loss_sums_kernel(prior_ref, pred_ref, clean_ref, out_ref,
                          acc_clean, acc_moire):
    """Accumulate sum(clean^2) and sum((prior-pred)^2) over the grid.

    acc_clean / acc_moire: (8, 128) f32 VMEM accumulators (VPU adds only per
    step). The single reduce-to-scalar happens on the last grid step.
    """
    i = pl.program_id(0)

    @pl.when(i == 0)
    def _():
        acc_clean[...] = jnp.zeros_like(acc_clean)
        acc_moire[...] = jnp.zeros_like(acc_moire)

    c = clean_ref[...].astype(jnp.float32)
    d = prior_ref[...].astype(jnp.float32) - pred_ref[...].astype(jnp.float32)

    br = c.shape[0]  # static block rows, multiple of 8
    # Fold (br, 128) -> (8, 128): reshape keeps (8,128) vreg tiles intact, so
    # the axis-0 sum lowers to elementwise vreg adds (no XLU per step).
    acc_clean[...] += jnp.sum((c * c).reshape(br // 8, 8, _LANES), axis=0)
    acc_moire[...] += jnp.sum((d * d).reshape(br // 8, 8, _LANES), axis=0)

    @pl.when(i == pl.num_programs(0) - 1)
    def _():
        out_ref[0, 0] = jnp.sum(acc_clean[...])
        out_ref[0, 1] = jnp.sum(acc_moire[...])


def _as_slab(flat, rows_padded):
    """View a flat vector as a (rows_padded, 128) lane-dense slab.

    Copy-free (pure reshape) when the element count already matches; otherwise
    a small zero pad (zeros contribute 0 to the squared sums).
    """
    n = flat.shape[0]
    padded_n = rows_padded * _LANES
    if padded_n != n:
        flat = jnp.pad(flat, (0, padded_n - n))
    return flat.reshape(rows_padded, _LANES)


def att_loss(moired_mask_prior, moired_mask_pred, clean_mask_pred):
    assert moired_mask_prior.shape == moired_mask_pred.shape, (
        "prior/pred masks must have the same shape")
    n_moire = moired_mask_prior.size
    n_clean = clean_mask_pred.size
    # Fused single-pass kernel assumes all three masks have the same element
    # count (true for this model: they are masks over the same image).
    assert n_clean == n_moire, "fused kernel assumes matching mask sizes"

    rows = pl.cdiv(n_moire, _LANES)
    rows8 = _round_up(rows, 8)                      # vreg sublane granularity
    block_rows = min(_MAX_BLOCK_ROWS, rows8)        # large streaming tile
    rows_padded = _round_up(rows8, block_rows)      # grid-even row count

    prior = _as_slab(jnp.ravel(moired_mask_prior), rows_padded)
    pred = _as_slab(jnp.ravel(moired_mask_pred), rows_padded)
    clean = _as_slab(jnp.ravel(clean_mask_pred), rows_padded)

    grid = (rows_padded // block_rows,)
    tile_spec = pl.BlockSpec((block_rows, _LANES), lambda i: (i, 0))

    sums = pl.pallas_call(
        _att_loss_sums_kernel,
        out_shape=jax.ShapeDtypeStruct((1, 2), jnp.float32),
        grid_spec=pltpu.PrefetchScalarGridSpec(
            num_scalar_prefetch=0,
            grid=grid,
            in_specs=[tile_spec, tile_spec, tile_spec],
            out_specs=pl.BlockSpec(
                (1, 2), lambda i: (0, 0), memory_space=pltpu.SMEM
            ),
            scratch_shapes=[
                pltpu.VMEM((8, _LANES), jnp.float32),  # acc_clean
                pltpu.VMEM((8, _LANES), jnp.float32),  # acc_moire
            ],
        ),
        compiler_params=pltpu.CompilerParams(
            dimension_semantics=("arbitrary",),  # resident accumulators
        ),
    )(prior, pred, clean)

    term_clean = sums[0, 0] / jnp.float32(n_clean)
    term_moire = sums[0, 1] / jnp.float32(n_moire)
    return term_clean + term_moire


def _ref_loss(prior, pred, clean):
    return jnp.mean(clean.astype(jnp.float32) ** 2) + jnp.mean(
        (prior.astype(jnp.float32) - pred.astype(jnp.float32)) ** 2
    )


if __name__ == "__main__":
    key = jax.random.PRNGKey(0)

    # (shape) test cases: tiny aligned, awkward (needs pad), multi-grid-step.
    shapes = [
        (2, 1, 16, 16),     # 512 elems  -> single (8,128) block
        (2, 1, 15, 15),     # 450 elems  -> exercises tail zero-pad
        (2, 1, 512, 512),   # 524288 elems -> 4096 rows -> 2 grid steps
    ]

    for shape in shapes:
        key, k1, k2, k3 = jax.random.split(key, 4)
        moired_mask_prior = jax.random.uniform(k1, shape, dtype=jnp.float32)
        moired_mask_pred = jax.random.uniform(k2, shape, dtype=jnp.float32)
        clean_mask_pred = jax.random.uniform(k3, shape, dtype=jnp.float32)

        loss = att_loss(moired_mask_prior, moired_mask_pred, clean_mask_pred)
        loss = jax.block_until_ready(loss)

        ref = _ref_loss(moired_mask_prior, moired_mask_pred, clean_mask_pred)
        assert jnp.allclose(loss, ref, rtol=1e-5, atol=1e-6), (shape, loss, ref)

    print("KERNEL_OK")
</pallas_src>

<mosaic_0001>
module attributes {stable_mosaic.version = 11 : i64} {
  func.func @_att_loss_sums_kernel(%arg0: i32, %arg1: memref<8x128xf32, #tpu.memory_space<vmem>>, %arg2: memref<8x128xf32, #tpu.memory_space<vmem>>, %arg3: memref<8x128xf32, #tpu.memory_space<vmem>>, %arg4: memref<1x2xf32, #tpu.memory_space<smem>>, %arg5: memref<8x128xf32, #tpu.memory_space<vmem>>, %arg6: memref<8x128xf32, #tpu.memory_space<vmem>>) attributes {dimension_semantics = [#tpu.dimension_semantics<arbitrary>], iteration_bounds = array<i64: 1>, scalar_prefetch = 0 : i64, scratch_operands = 2 : i64, tpu.core_type = #tpu.core_type<tc>, window_params = [{transform_indices = @transform_0, window_bounds = array<i64: 8, 128>}, {transform_indices = @transform_1, window_bounds = array<i64: 8, 128>}, {transform_indices = @transform_2, window_bounds = array<i64: 8, 128>}, {transform_indices = @transform_3, window_bounds = array<i64: 1, 2>}]} {
    %c0_i32 = arith.constant 0 : i32
    %0 = arith.cmpi eq, %arg0, %c0_i32 : i32
    %1 = arith.extui %0 : i1 to i32
    %c0_i32_0 = arith.constant 0 : i32
    %2 = arith.cmpi ne, %1, %c0_i32_0 : i32
    scf.if %2 {
      %cst_17 = arith.constant 0.000000e+00 : f32
      %22 = vector.broadcast %cst_17 : f32 to vector<8x128xf32>
      %c0_18 = arith.constant 0 : index
      %c0_19 = arith.constant 0 : index
      %23 = vector.load %arg5[%c0_18, %c0_19] : memref<8x128xf32, #tpu.memory_space<vmem>>, vector<8x128xf32>
      tpu.vector_store %arg5[%c0_18, %c0_19], %22 {strides = array<i32>} : memref<8x128xf32, #tpu.memory_space<vmem>>, vector<8x128xf32>,
      %cst_20 = arith.constant 0.000000e+00 : f32
      %24 = vector.broadcast %cst_20 : f32 to vector<8x128xf32>
      %c0_21 = arith.constant 0 : index
      %c0_22 = arith.constant 0 : index
      %25 = vector.load %arg6[%c0_21, %c0_22] : memref<8x128xf32, #tpu.memory_space<vmem>>, vector<8x128xf32>
      tpu.vector_store %arg6[%c0_21, %c0_22], %24 {strides = array<i32>} : memref<8x128xf32, #tpu.memory_space<vmem>>, vector<8x128xf32>,
    } else {
    }
    %c0 = arith.constant 0 : index
    %c0_1 = arith.constant 0 : index
    %3 = vector.load %arg3[%c0, %c0_1] : memref<8x128xf32, #tpu.memory_space<vmem>>, vector<8x128xf32>
    %c0_2 = arith.constant 0 : index
    %c0_3 = arith.constant 0 : index
    %4 = vector.load %arg1[%c0_2, %c0_3] : memref<8x128xf32, #tpu.memory_space<vmem>>, vector<8x128xf32>
    %c0_4 = arith.constant 0 : index
    %c0_5 = arith.constant 0 : index
    %5 = vector.load %arg2[%c0_4, %c0_5] : memref<8x128xf32, #tpu.memory_space<vmem>>, vector<8x128xf32>
    %6 = arith.subf %4, %5 : vector<8x128xf32>
    %c0_6 = arith.constant 0 : index
    %c0_7 = arith.constant 0 : index
    %7 = vector.load %arg5[%c0_6, %c0_7] : memref<8x128xf32, #tpu.memory_space<vmem>>, vector<8x128xf32>
    %8 = arith.mulf %3, %3 : vector<8x128xf32>
    %9 = vector.shape_cast %8 : vector<8x128xf32> to vector<1x8x128xf32>
    %cst = arith.constant dense<0.000000e+00> : vector<8x128xf32>
    %10 = vector.multi_reduction <add>, %9, %cst [0] : vector<1x8x128xf32> to vector<8x128xf32>
    %11 = arith.addf %7, %10 : vector<8x128xf32>
    %c0_8 = arith.constant 0 : index
    %c0_9 = arith.constant 0 : index
    %12 = vector.load %arg5[%c0_8, %c0_9] : memref<8x128xf32, #tpu.memory_space<vmem>>, vector<8x128xf32>
    tpu.vector_store %arg5[%c0_8, %c0_9], %11 {strides = array<i32>} : memref<8x128xf32, #tpu.memory_space<vmem>>, vector<8x128xf32>,
    %c0_10 = arith.constant 0 : index
    %c0_11 = arith.constant 0 : index
    %13 = vector.load %arg6[%c0_10, %c0_11] : memref<8x128xf32, #tpu.memory_space<vmem>>, vector<8x128xf32>
    %14 = arith.mulf %6, %6 : vector<8x128xf32>
    %15 = vector.shape_cast %14 : vector<8x128xf32> to vector<1x8x128xf32>
    %cst_12 = arith.constant dense<0.000000e+00> : vector<8x128xf32>
    %16 = vector.multi_reduction <add>, %15, %cst_12 [0] : vector<1x8x128xf32> to vector<8x128xf32>
    %17 = arith.addf %13, %16 : vector<8x128xf32>
    %c0_13 = arith.constant 0 : index
    %c0_14 = arith.constant 0 : index
    %18 = vector.load %arg6[%c0_13, %c0_14] : memref<8x128xf32, #tpu.memory_space<vmem>>, vector<8x128xf32>
    tpu.vector_store %arg6[%c0_13, %c0_14], %17 {strides = array<i32>} : memref<8x128xf32, #tpu.memory_space<vmem>>, vector<8x128xf32>,
    %c0_i32_15 = arith.constant 0 : i32
    %19 = arith.cmpi eq, %arg0, %c0_i32_15 : i32
    %20 = arith.extui %19 : i1 to i32
    %c0_i32_16 = arith.constant 0 : i32
    %21 = arith.cmpi ne, %20, %c0_i32_16 : i32
    scf.if %21 {
      %c0_17 = arith.constant 0 : index
      %c0_18 = arith.constant 0 : index
      %22 = vector.load %arg5[%c0_17, %c0_18] : memref<8x128xf32, #tpu.memory_space<vmem>>, vector<8x128xf32>
      %23 = vector.shape_cast %22 : vector<8x128xf32> to vector<1x8x128xf32>
      %cst_19 = arith.constant dense<0.000000e+00> : vector<1xf32>
      %24 = vector.multi_reduction <add>, %23, %cst_19 [1, 2] : vector<1x8x128xf32> to vector<1xf32>
      %25 = vector.shape_cast %24 : vector<1xf32> to vector<1x1x1xf32>
      %26 = vector.extract %25[0, 0, 0] : f32 from vector<1x1x1xf32>
      %c0_20 = arith.constant 0 : index
      %c0_21 = arith.constant 0 : index
      %27 = memref.load %arg4[%c0_20, %c0_21] : memref<1x2xf32, #tpu.memory_space<smem>>
      memref.store %26, %arg4[%c0_20, %c0_21] : memref<1x2xf32, #tpu.memory_space<smem>>
      %c0_22 = arith.constant 0 : index
      %c0_23 = arith.constant 0 : index
      %28 = vector.load %arg6[%c0_22, %c0_23] : memref<8x128xf32, #tpu.memory_space<vmem>>, vector<8x128xf32>
      %29 = vector.shape_cast %28 : vector<8x128xf32> to vector<1x8x128xf32>
      %cst_24 = arith.constant dense<0.000000e+00> : vector<1xf32>
      %30 = vector.multi_reduction <add>, %29, %cst_24 [1, 2] : vector<1x8x128xf32> to vector<1xf32>
      %31 = vector.shape_cast %30 : vector<1xf32> to vector<1x1x1xf32>
      %32 = vector.extract %31[0, 0, 0] : f32 from vector<1x1x1xf32>
      %c0_25 = arith.constant 0 : index
      %c1 = arith.constant 1 : index
      %33 = memref.load %arg4[%c0_25, %c1] : memref<1x2xf32, #tpu.memory_space<smem>>
      memref.store %32, %arg4[%c0_25, %c1] : memref<1x2xf32, #tpu.memory_space<smem>>
    } else {
    }
    return
  }
  func.func @transform_0(%arg0: i32) -> (i32, i32) {
    %c0_i32 = arith.constant 0 : i32
    %c0_i32_0 = arith.constant 0 : i32
    return %arg0, %c0_i32 : i32, i32
  }
  func.func @transform_1(%arg0: i32) -> (i32, i32) {
    %c0_i32 = arith.constant 0 : i32
    %c0_i32_0 = arith.constant 0 : i32
    return %arg0, %c0_i32 : i32, i32
  }
  func.func @transform_2(%arg0: i32) -> (i32, i32) {
    %c0_i32 = arith.constant 0 : i32
    %c0_i32_0 = arith.constant 0 : i32
    return %arg0, %c0_i32 : i32, i32
  }
  func.func @transform_3(%arg0: i32) -> (i32, i32) {
    %c0_i32 = arith.constant 0 : i32
    %c0_i32_0 = arith.constant 0 : i32
    %c0_i32_1 = arith.constant 0 : i32
    return %c0_i32, %c0_i32_0 : i32, i32
  }
}

</mosaic_0001>

<bundles_post_ra>
// kernel: tpu_custom_call.1
= control target key start
LH: loop header
LB: loop body
LE: loop exit
PB: predicated region body
PF: predicated region fallthrough
CT: control target
= control target key end

     0   :  { %8 = vsyncpa [#allocation5], 0  ;;  %s254_s0 = inlined_call_operand.hbm [shape: f32[8,128], index: 0, kind: input, shape index: {}]   ;;  %s255_s1 = inlined_call_operand.hbm [shape: f32[8,128], index: 1, kind: input, shape index: {}]   ;;  %s256_s2 = inlined_call_operand.hbm [shape: f32[8,128], index: 2, kind: input, shape index: {}]   ;;  %s257_s3 = inlined_call_operand.hbm [shape: f32[1,2], index: 3, kind: output, shape index: {}]  }
   0x1   :  { %9 = vsyncpa [#allocation8], 0  ;;  %s27_s14 = sshll.u32 %s255_s1, 4  ;;  %s28_s14 = int_to_ptr.hbm [resolvable:$true] %s27_s14 }
   0x2   :  { %10 = vsyncpa [#allocation6], 0  ;;  %s218_s15 = smov [#allocation7]   ;;  %s16_s19 = sshll.u32 %s254_s0, 4  ;;  %s17_s19 = int_to_ptr.hbm [resolvable:$true] %s16_s19 }
   0x3   :  { %s29_s16 = sshll.u32 %s218_s15, 4  ;;  %s219_s20 = smov [#allocation4]   ;;  %s30_s16 = int_to_ptr.vmem [resolvable:$true] %s29_s16 }
   0x4   :  { %32 = dma.hbm_to_vmem [thread:$0]  %s28_s14, 128, %s30_s16, [#allocation8]  }
   0x5   :  { %s18_s21 = sshll.u32 %s219_s20, 4  ;;  %s38_s24 = sshll.u32 %s256_s2, 4  ;;  %s19_s21 = int_to_ptr.vmem [resolvable:$true] %s18_s21  ;;  %s39_s24 = int_to_ptr.hbm [resolvable:$true] %s38_s24 }
   0x6   :  { %21 = dma.hbm_to_vmem [thread:$0]  %s17_s19, 128, %s19_s21, [#allocation5]  }
   0x7   :  { %s220_s1 = smov [#allocation9]  }
   0x8   :  { %s40_s25 = sshll.u32 %s220_s1, 4  ;;  %s41_s25 = int_to_ptr.vmem [resolvable:$true] %s40_s25 }
   0x9   :  { %43 = dma.hbm_to_vmem [thread:$0]  %s39_s24, 128, %s41_s25, [#allocation8]  }
   0xa   :  { %212 = dma.done.wait [#allocation5], 128  }
   0xb   :  { %213 = vsyncadd [#allocation5], 4294967168 }
   0xc   :  { %214 = dma.done.wait [#allocation8], 256  }
   0xd   :  { %215 = vsyncadd [#allocation8], 4294967040  ;;  %v62_v0 = vld [vmem:[#allocation9] sm:$0xff]  ;;  %v63_v1 = vld [vmem:[#allocation4] sm:$0xff]  ;;  %s108_s27 = sshll.u32 %s257_s3, 4  ;;  %s221_s29 = smov [#allocation10]   ;;  %s109_s27 = int_to_ptr.hbm [resolvable:$true] %s108_s27 }
   0xe   :  { %v64_v2 = vld [vmem:[#allocation7] sm:$0xff]  ;;  %v67_v3 = vmul.f32 %v62_v0, %v62_v0 }
   0xf   :  { %v65_v4 = vsub.f32 %v63_v1, %v64_v2 }
  0x10   :  { %80 = vadd.xlane.f32.xlu0 %v67_v3 }
  0x11   :  { %v72_v5 = vmul.f32 %v65_v4, %v65_v4 }
  0x18   :  { %92 = vadd.xlane.f32.xlu0 %v72_v5 }
  0x83   :  { %v81_v6 = vpop.xlane.xlu0 %80 }
  0x84   :  { %v82_v7 = vrot.slane %v81_v6, 4 }
  0x86   :  { %v83_v8 = vadd.f32 %v82_v7, %v81_v6 }
  0x88   :  { %v84_v9 = vrot.slane %v83_v8, 2 }
  0x8a   :  { %v85_v10 = vadd.f32 %v84_v9, %v83_v8 }
  0x8b   :  { %v93_v11 = vpop.xlane.xlu0 %92 }
  0x8c   :  { %v94_v12 = vrot.slane %v93_v11, 4  ;;  %v86_v13 = vrot.slane %v85_v10, 1 }
  0x8e   :  { %v95_v14 = vadd.f32 %v94_v12, %v93_v11  ;;  %v87_v15 = vadd.f32 %v86_v13, %v85_v10 }
  0x90   :  { %v96_v16 = vrot.slane %v95_v14, 2  ;;  %120 = vpush %v87_v15 }
  0x92   :  { %v97_v17 = vadd.f32 %v96_v16, %v95_v14 }
  0x94   :  { %v98_v18 = vrot.slane %v97_v17, 1 }
  0x96   :  { %v99_v19 = vadd.f32 %v98_v18, %v97_v17 }
  0x98   :  { %122 = vpush %v99_v19 }
  0xc1   :  { %s121_s0 = spop %120 }
  0xc2   :  { %90 = sst [smem:[#allocation10]] %s121_s0 }
  0xc9   :  { %s123_s28 = spop %122 }
  0xca   :  { %102 = sst [smem:[#allocation10 + $0x1]] %s123_s28 }
  0xcb   :  { %111 = dma.smem_to_hbm %s221_s29, 16, %s109_s27, [#allocation6]  }
  0xcc   :  { %216 = dma.done.wait [#allocation6], 16  }
  0xcd   :  { %217 = vsyncadd [#allocation6], 4294967280 }
  0xce   :  { %116 = sfence }
  0xcf   :  { %117 = vsyncpa [#allocation5], 1 }
  0xd0   :  { %118 = vsyncpa [#allocation8], 1 }
  0xd1   :  { %119 = vsyncpa [#allocation6], 1 }

</bundles_post_ra>
